<compile_context>
chip_gen: v6e
topology: v6e:2x2x1
jax: 0.10.0
libtpu: 0.0.40
codegen_flags: <defaults>
</compile_context>

<pallas_src>
import jax
import jax.numpy as jnp
from jax import lax
from jax.experimental import pallas as pl
from jax.experimental.pallas import tpu as pltpu


_CHUNK_ROWS = 1024  # inner compute chunk (rows) inside one grid-step tile


def _round_up(v, m):
    return -(-v // m) * m


def _make_mlp_kernel(chunk, n_chunks, mxu_dtype):
    """Build the kernel for a fixed (static) chunk decomposition."""
    cast = (lambda a: a.astype(mxu_dtype)) if mxu_dtype is not None else (lambda a: a)

    def kernel(x_ref, w1_ref, b1_ref, w2_ref, b2_ref, w3_ref, b3_ref, o_ref):
        # Weights / biases are VMEM-resident (constant index_map): load once.
        w1 = cast(w1_ref[...]); b1 = b1_ref[...]
        w2 = cast(w2_ref[...]); b2 = b2_ref[...]
        w3 = cast(w3_ref[...]); b3 = b3_ref[...]
        # Contract in_features (dim 1 of x / h) with dim 1 of the PyTorch-layout
        # weight (out_features, in_features):  y = x @ W.T
        cdims = (((1,), (1,)), ((), ()))

        def compute_rows(r0):
            xb = cast(x_ref[pl.ds(r0, chunk), :])
            h1 = lax.dot_general(xb, w1, cdims, preferred_element_type=jnp.float32)
            h1 = jnp.maximum(h1 + b1, 0.0)
            h2 = lax.dot_general(cast(h1), w2, cdims,
                                 preferred_element_type=jnp.float32)
            h2 = jnp.maximum(h2 + b2, 0.0)
            o = lax.dot_general(cast(h2), w3, cdims,
                                preferred_element_type=jnp.float32)
            o_ref[pl.ds(r0, chunk), :] = (o + b3).astype(o_ref.dtype)

        if n_chunks == 1:
            compute_rows(0)
        else:
            def body(c, val):
                compute_rows(pl.multiple_of(c * chunk, chunk))
                return val
            lax.fori_loop(0, n_chunks, body, 0)

    return kernel


def mlp_forward(x, params, tile_b=16384, mxu_dtype=None):
    """Forward pass of the 3-layer MLP in one Pallas call.

    x: (B, input_layer) float32, native layout (no wrapper-side copies).
    params: PyTorch-layout weights:
        w1 (hid, in),  b1 (1, hid)
        w2 (hid, hid), b2 (1, hid)
        w3 (out, hid), b3 (1, out)
    Computes y = relu(x @ W1.T + b1) -> relu(@ W2.T + b2) -> @ W3.T + b3,
    exactly like the nn.Sequential in the reference module.
    """
    w1, b1 = params["w1"], params["b1"]
    w2, b2 = params["w2"], params["b2"]
    w3, b3 = params["w3"], params["b3"]

    B, in_dim = x.shape
    hid = w1.shape[0]
    out_dim = w3.shape[0]

    # ---- pick the batch tile (second-to-last dim => multiple of 8) --------
    tile_b = max(8, (int(tile_b) // 8) * 8)
    if B > 256:
        gran = 256 if B >= 512 else 8                       # MXU-friendly rounding
        tile_b = min(tile_b, _round_up(pl.cdiv(B, 2), gran))  # keep grid >= 2 (v7x)
    if tile_b >= B:
        tile_b = B                                          # single full-dim block
    grid = (pl.cdiv(B, tile_b),)                            # ragged last block is OK

    # Inner chunk loop keeps h1/h2 temporaries small at large tile_b.
    if tile_b > _CHUNK_ROWS and tile_b % _CHUNK_ROWS == 0:
        chunk, n_chunks = _CHUNK_ROWS, tile_b // _CHUNK_ROWS
    else:
        chunk, n_chunks = tile_b, 1

    def resident(arr):
        # Whole-array block, constant index_map -> DMA'd into VMEM once.
        return pl.BlockSpec(arr.shape, lambda i: (0, 0))

    flops = 2 * B * (in_dim * hid + hid * hid + hid * out_dim)
    bytes_accessed = 4 * (B * (in_dim + out_dim)
                          + w1.size + b1.size + w2.size + b2.size
                          + w3.size + b3.size)

    return pl.pallas_call(
        _make_mlp_kernel(chunk, n_chunks, mxu_dtype),
        out_shape=jax.ShapeDtypeStruct((B, out_dim), x.dtype),
        grid_spec=pltpu.PrefetchScalarGridSpec(
            num_scalar_prefetch=0,
            grid=grid,
            in_specs=[
                pl.BlockSpec((tile_b, in_dim), lambda i: (i, 0)),   # x tile
                resident(w1), resident(b1),
                resident(w2), resident(b2),
                resident(w3), resident(b3),
            ],
            out_specs=pl.BlockSpec((tile_b, out_dim), lambda i: (i, 0)),
        ),
        compiler_params=pltpu.CompilerParams(
            dimension_semantics=("parallel",)),                     # megacore on v7x
        cost_estimate=pl.CostEstimate(
            flops=flops, transcendentals=0, bytes_accessed=bytes_accessed),
    )(x, w1, b1, w2, b2, w3, b3)


def init_params(key, input_layer, hidden_layer, output_layer):
    """PyTorch nn.Linear default init: U[-1/sqrt(fan_in), 1/sqrt(fan_in)].

    Weights kept in PyTorch layout (out_features, in_features); biases stored
    as (1, out_features) rows so they broadcast over the batch (sublane) axis.
    """
    ks = jax.random.split(key, 6)

    def lin(kw, kb, fan_in, fan_out):
        bound = 1.0 / jnp.sqrt(jnp.float32(fan_in))
        w = jax.random.uniform(kw, (fan_out, fan_in), jnp.float32, -bound, bound)
        b = jax.random.uniform(kb, (1, fan_out), jnp.float32, -bound, bound)
        return w, b

    w1, b1 = lin(ks[0], ks[1], input_layer, hidden_layer)
    w2, b2 = lin(ks[2], ks[3], hidden_layer, hidden_layer)
    w3, b3 = lin(ks[4], ks[5], hidden_layer, output_layer)
    return {"w1": w1, "b1": b1, "w2": w2, "b2": b2, "w3": w3, "b3": b3}


def mlp_reference(x, p):
    h1 = jnp.maximum(x @ p["w1"].T + p["b1"], 0.0)
    h2 = jnp.maximum(h1 @ p["w2"].T + p["b2"], 0.0)
    return h2 @ p["w3"].T + p["b3"]


if __name__ == "__main__":
    # LunarLander-ish sizes: obs dim 8, hidden 32, 4 actions.
    input_layer, hidden_layer, output_layer = 8, 32, 4

    key = jax.random.PRNGKey(0)
    k_x1, k_x2, k_x3, k_p = jax.random.split(key, 4)
    params = init_params(k_p, input_layer, hidden_layer, output_layer)

    # 1) Tiny batch: single block whose shape equals the full array.
    x_small = jax.random.normal(k_x1, (8, input_layer), jnp.float32)
    out_small = jax.block_until_ready(mlp_forward(x_small, params))
    ref_small = mlp_reference(x_small, params)
    assert out_small.shape == (8, output_layer)
    assert jnp.allclose(out_small, ref_small, atol=1e-5, rtol=1e-5), \
        "small-batch mismatch vs reference"

    # 2) Ragged multi-step grid: 300 rows with 128-row tiles -> 128+128+44,
    #    exercising Pallas masking of the last block with resident weights.
    x_rag = jax.random.normal(k_x2, (300, input_layer), jnp.float32)
    out_rag = jax.block_until_ready(mlp_forward(x_rag, params, tile_b=128))
    ref_rag = mlp_reference(x_rag, params)
    assert out_rag.shape == (300, output_layer)
    assert jnp.allclose(out_rag, ref_rag, atol=1e-5, rtol=1e-5), \
        "ragged-batch mismatch vs reference"

    # 3) Default tile path: B=512 -> tile_b auto-capped to 256 so grid=2
    #    (both v7x TensorCores busy), lane-aligned tiles.
    x_def = jax.random.normal(k_x3, (512, input_layer), jnp.float32)
    out_def = jax.block_until_ready(mlp_forward(x_def, params))
    ref_def = mlp_reference(x_def, params)
    assert out_def.shape == (512, output_layer)
    assert jnp.allclose(out_def, ref_def, atol=1e-5, rtol=1e-5), \
        "default-tile mismatch vs reference"

    print("KERNEL_OK")
</pallas_src>

<mosaic_0001>
module attributes {stable_mosaic.version = 11 : i64} {
  func.func @kernel(%arg0: i32, %arg1: memref<8x8xf32, #tpu.memory_space<vmem>>, %arg2: memref<32x8xf32, #tpu.memory_space<vmem>>, %arg3: memref<1x32xf32, #tpu.memory_space<vmem>>, %arg4: memref<32x32xf32, #tpu.memory_space<vmem>>, %arg5: memref<1x32xf32, #tpu.memory_space<vmem>>, %arg6: memref<4x32xf32, #tpu.memory_space<vmem>>, %arg7: memref<1x4xf32, #tpu.memory_space<vmem>>, %arg8: memref<8x4xf32, #tpu.memory_space<vmem>>) attributes {dimension_semantics = [#tpu.dimension_semantics<parallel>], iteration_bounds = array<i64: 1>, scalar_prefetch = 0 : i64, scratch_operands = 0 : i64, tpu.core_type = #tpu.core_type<tc>, window_params = [{transform_indices = @transform_0, window_bounds = array<i64: 8, 8>}, {pipeline_mode = #tpu.pipeline_mode<synchronous>, transform_indices = @transform_1, window_bounds = array<i64: 32, 8>}, {pipeline_mode = #tpu.pipeline_mode<synchronous>, transform_indices = @transform_2, window_bounds = array<i64: 1, 32>}, {pipeline_mode = #tpu.pipeline_mode<synchronous>, transform_indices = @transform_3, window_bounds = array<i64: 32, 32>}, {pipeline_mode = #tpu.pipeline_mode<synchronous>, transform_indices = @transform_4, window_bounds = array<i64: 1, 32>}, {pipeline_mode = #tpu.pipeline_mode<synchronous>, transform_indices = @transform_5, window_bounds = array<i64: 4, 32>}, {pipeline_mode = #tpu.pipeline_mode<synchronous>, transform_indices = @transform_6, window_bounds = array<i64: 1, 4>}, {transform_indices = @transform_7, window_bounds = array<i64: 8, 4>}]} {
    %c0 = arith.constant 0 : index
    %c0_0 = arith.constant 0 : index
    %0 = vector.load %arg2[%c0, %c0_0] : memref<32x8xf32, #tpu.memory_space<vmem>>, vector<32x8xf32>
    %c0_1 = arith.constant 0 : index
    %c0_2 = arith.constant 0 : index
    %1 = vector.load %arg3[%c0_1, %c0_2] : memref<1x32xf32, #tpu.memory_space<vmem>>, vector<1x32xf32>
    %c0_3 = arith.constant 0 : index
    %c0_4 = arith.constant 0 : index
    %2 = vector.load %arg4[%c0_3, %c0_4] : memref<32x32xf32, #tpu.memory_space<vmem>>, vector<32x32xf32>
    %c0_5 = arith.constant 0 : index
    %c0_6 = arith.constant 0 : index
    %3 = vector.load %arg5[%c0_5, %c0_6] : memref<1x32xf32, #tpu.memory_space<vmem>>, vector<1x32xf32>
    %c0_7 = arith.constant 0 : index
    %c0_8 = arith.constant 0 : index
    %4 = vector.load %arg6[%c0_7, %c0_8] : memref<4x32xf32, #tpu.memory_space<vmem>>, vector<4x32xf32>
    %c0_9 = arith.constant 0 : index
    %c0_10 = arith.constant 0 : index
    %5 = vector.load %arg7[%c0_9, %c0_10] : memref<1x4xf32, #tpu.memory_space<vmem>>, vector<1x4xf32>
    %c0_11 = arith.constant 0 : index
    %c0_12 = arith.constant 0 : index
    %6 = vector.load %arg1[%c0_11, %c0_12] : memref<8x8xf32, #tpu.memory_space<vmem>>, vector<8x8xf32>
    %cst = arith.constant dense<0.000000e+00> : vector<8x32xf32>
    %7 = tpu.matmul %6, %0, %cst {dimension_numbers = #tpu.dot_dimension_numbers<[1], [1], [0], [0], [0, 0, 1, 0], [], []>} : vector<8x8xf32>, vector<32x8xf32>, vector<8x32xf32> -> vector<8x32xf32>
    %8 = vector.broadcast %1 : vector<1x32xf32> to vector<8x32xf32>
    %9 = arith.addf %7, %8 : vector<8x32xf32>
    %cst_13 = arith.constant 0.000000e+00 : f32
    %10 = vector.broadcast %cst_13 : f32 to vector<8x32xf32>
    %11 = arith.maximumf %9, %10 : vector<8x32xf32>
    %cst_14 = arith.constant dense<0.000000e+00> : vector<8x32xf32>
    %12 = tpu.matmul %11, %2, %cst_14 {dimension_numbers = #tpu.dot_dimension_numbers<[1], [1], [0], [0], [0, 0, 1, 0], [], []>} : vector<8x32xf32>, vector<32x32xf32>, vector<8x32xf32> -> vector<8x32xf32>
    %13 = vector.broadcast %3 : vector<1x32xf32> to vector<8x32xf32>
    %14 = arith.addf %12, %13 : vector<8x32xf32>
    %cst_15 = arith.constant 0.000000e+00 : f32
    %15 = vector.broadcast %cst_15 : f32 to vector<8x32xf32>
    %16 = arith.maximumf %14, %15 : vector<8x32xf32>
    %cst_16 = arith.constant dense<0.000000e+00> : vector<8x4xf32>
    %17 = tpu.matmul %16, %4, %cst_16 {dimension_numbers = #tpu.dot_dimension_numbers<[1], [1], [0], [0], [0, 0, 1, 0], [], []>} : vector<8x32xf32>, vector<4x32xf32>, vector<8x4xf32> -> vector<8x4xf32>
    %18 = vector.broadcast %5 : vector<1x4xf32> to vector<8x4xf32>
    %19 = arith.addf %17, %18 : vector<8x4xf32>
    %c0_17 = arith.constant 0 : index
    %c0_18 = arith.constant 0 : index
    %20 = vector.load %arg8[%c0_17, %c0_18] : memref<8x4xf32, #tpu.memory_space<vmem>>, vector<8x4xf32>
    tpu.vector_store %arg8[%c0_17, %c0_18], %19 {strides = array<i32>} : memref<8x4xf32, #tpu.memory_space<vmem>>, vector<8x4xf32>,
    return
  }
  func.func @transform_0(%arg0: i32) -> (i32, i32) {
    %c0_i32 = arith.constant 0 : i32
    %c0_i32_0 = arith.constant 0 : i32
    return %arg0, %c0_i32 : i32, i32
  }
  func.func @transform_1(%arg0: i32) -> (i32, i32) {
    %c0_i32 = arith.constant 0 : i32
    %c0_i32_0 = arith.constant 0 : i32
    %c0_i32_1 = arith.constant 0 : i32
    return %c0_i32, %c0_i32_0 : i32, i32
  }
  func.func @transform_2(%arg0: i32) -> (i32, i32) {
    %c0_i32 = arith.constant 0 : i32
    %c0_i32_0 = arith.constant 0 : i32
    %c0_i32_1 = arith.constant 0 : i32
    return %c0_i32, %c0_i32_0 : i32, i32
  }
  func.func @transform_3(%arg0: i32) -> (i32, i32) {
    %c0_i32 = arith.constant 0 : i32
    %c0_i32_0 = arith.constant 0 : i32
    %c0_i32_1 = arith.constant 0 : i32
    return %c0_i32, %c0_i32_0 : i32, i32
  }
  func.func @transform_4(%arg0: i32) -> (i32, i32) {
    %c0_i32 = arith.constant 0 : i32
    %c0_i32_0 = arith.constant 0 : i32
    %c0_i32_1 = arith.constant 0 : i32
    return %c0_i32, %c0_i32_0 : i32, i32
  }
  func.func @transform_5(%arg0: i32) -> (i32, i32) {
    %c0_i32 = arith.constant 0 : i32
    %c0_i32_0 = arith.constant 0 : i32
    %c0_i32_1 = arith.constant 0 : i32
    return %c0_i32, %c0_i32_0 : i32, i32
  }
  func.func @transform_6(%arg0: i32) -> (i32, i32) {
    %c0_i32 = arith.constant 0 : i32
    %c0_i32_0 = arith.constant 0 : i32
    %c0_i32_1 = arith.constant 0 : i32
    return %c0_i32, %c0_i32_0 : i32, i32
  }
  func.func @transform_7(%arg0: i32) -> (i32, i32) {
    %c0_i32 = arith.constant 0 : i32
    %c0_i32_0 = arith.constant 0 : i32
    return %arg0, %c0_i32 : i32, i32
  }
}

</mosaic_0001>

<bundles_post_ra>
// kernel: tpu_custom_call.1
= control target key start
LH: loop header
LB: loop body
LE: loop exit
PB: predicated region body
PF: predicated region fallthrough
CT: control target
= control target key end

     0   :  { %vm45_vm0 = vcmask 64512   ;;  %vm138_vm1 = vcmask 261120   ;;  %v369_v0 = vmov 0.0   ;;  %vm370_vm2 = vmmov 0   ;;  %s468_s1 = inlined_call_operand.vmem [shape: f32[32,8], index: 1, kind: input, shape index: {}]   ;;  %s469_s3 = inlined_call_operand.vmem [shape: f32[32,32], index: 3, kind: input, shape index: {}]   ;;  %s470_s0 = inlined_call_operand.vmem [shape: f32[8,8], index: 0, kind: input, shape index: {}]   ;;  %s471_s2 = inlined_call_operand.vmem [shape: f32[1,32], index: 2, kind: input, shape index: {}]   ;;  %s472_s5 = inlined_call_operand.vmem [shape: f32[4,32], index: 5, kind: input, shape index: {}]   ;;  %s473_s4 = inlined_call_operand.vmem [shape: f32[1,32], index: 4, kind: input, shape index: {}]   ;;  %s474_s6 = inlined_call_operand.vmem [shape: f32[1,4], index: 6, kind: input, shape index: {}]   ;;  %s475_s7 = inlined_call_operand.vmem [shape: f32[8,4], index: 7, kind: output, shape index: {}]  }
   0x1   :  { %340 = vmatprep.subr.mxu0 %v369_v0  ;;  %v29_v1 = vld [vmem:[%s468_s1 + $0x18] sm:$0xff]  ;;  %348 = vmatprep.mubr.msk.f32.mxu0 %vm370_vm2, %v369_v0  ;;  %v28_v3 = vld [vmem:[%s468_s1 + $0x10] sm:$0xff]  ;;  %v27_v5 = vld [vmem:[%s468_s1 + $0x8] sm:$0xff]  ;;  %vm307_vm3 = vcmask 31744  }
   0x2   :  { %341 = vmatpush3.xpose.msk.msra.mxu0 %vm45_vm0, %v29_v1  ;;  %351 = vmatprep.subr.mxu1 %v369_v0  ;;  %v34_v2 = vld [vmem:[%s469_s3 + $0x18] sm:$0xff]  ;;  %v33_v4 = vld [vmem:[%s469_s3 + $0x10] sm:$0xff]  ;;  %v32_v6 = vld [vmem:[%s469_s3 + $0x8] sm:$0xff] }
   0x3   :  { %342 = vmatprep.subr.mxu0 %v369_v0  ;;  %352 = vmatpush3.xpose.msk.msra.mxu1 %vm138_vm1, %v34_v2  ;;  %v26_v7 = vld [vmem:[%s468_s1] sm:$0xff] }
   0x4   :  { %353 = vmatprep.subr.mxu1 %v369_v0  ;;  %359 = vmatprep.mubr.msk.f32.mxu1 %vm370_vm2, %v369_v0  ;;  %v38_v8 = vld [vmem:[%s470_s0] sm:$0xff] }
   0x5   :  { %v31_v9 = vld [vmem:[%s469_s3] sm:$0xff] }
   0x6   :  { %343 = vmatpush3.xpose.msk.msra.mxu0 %vm45_vm0, %v28_v3  ;;  %v313_v10 = vld [vmem:[%s471_s2] ss:$0 sm:$0xff] }
   0x7   :  { %344 = vmatprep.subr.mxu0 %v369_v0  ;;  %354 = vmatpush3.xpose.msk.msra.mxu1 %vm138_vm1, %v33_v4  ;;  %v36_v15 = vld [vmem:[%s472_s5] sm:$0xf] }
   0x8   :  { %355 = vmatprep.subr.mxu1 %v369_v0  ;;  %v319_v16 = vld [vmem:[%s473_s4] ss:$0 sm:$0xff] }
   0x9   :  { %v325_v21 = vld [vmem:[%s474_s6] ss:$0 sm:$0xff] }
   0xa   :  { %345 = vmatpush3.xpose.msk.msra.mxu0 %vm45_vm0, %v27_v5 }
   0xb   :  { %346 = vmatprep.subr.mxu0 %v369_v0  ;;  %356 = vmatpush3.xpose.msk.msra.mxu1 %vm138_vm1, %v32_v6 }
   0xc   :  { %357 = vmatprep.subr.mxu1 %v369_v0 }
   0xe   :  { %347 = vmatpush3.xpose.msk.msra.mxu0 %vm45_vm0, %v26_v7 }
   0xf   :  { %362 = vmatprep.subr.mxu0 %v369_v0  ;;  %358 = vmatpush3.xpose.msk.msra.mxu1 %vm138_vm1, %v31_v9 }
  0x11   :  { %349 = vmatmul.mubr.msk.f32.vlgmr.msra.gmra.mxu0 %vm45_vm0, %v38_v8 }
  0x12   :  { %364 = vmatprep.mubr.msk.f32.mxu0 %vm370_vm2, %v369_v0  ;;  %363 = vmatpush3.xpose.msk.msra.mxu0 %vm138_vm1, %v36_v15 }
  0xd1   :  { %v127_v11 = vpop.f32.mrf.mxu0 }
  0xd2   :  { %v128_v12 = vadd.f32 %v313_v10, %v127_v11 }
  0xd3   :  { %v350_v13 = vpop.f32.mrf.mxu0 }
  0xd4   :  { %v131_v14 = vmax.f32 %v128_v12, 0.0 }
  0xd6   :  { %360 = vmatmul.mubr.msk.f32.vlgmr.msra.gmra.mxu1 %vm138_vm1, %v131_v14 }
 0x196   :  { %v220_v17 = vpop.f32.mrf.mxu1 }
 0x197   :  { %v221_v18 = vadd.f32 %v319_v16, %v220_v17 }
 0x198   :  { %v361_v19 = vpop.f32.mrf.mxu1 }
 0x199   :  { %v224_v20 = vmax.f32 %v221_v18, 0.0 }
 0x19b   :  { %365 = vmatmul.mubr.msk.f32.vlgmr.msra.gmra.mxu0 %vm138_vm1, %v224_v20 }
 0x25b   :  { %v303_v22 = vpop.f32.mrf.mxu0 }
 0x25c   :  { %v304_v23 = vadd.f32 %v325_v21, %v303_v22 }
 0x25d   :  { %v366_v24 = vpop.f32.mrf.mxu0 }
 0x25e   :  { %308 = vst.msk [vmem:[%s475_s7] sm:$0xff] %vm307_vm3, %v304_v23 }

</bundles_post_ra>
